<compile_context>
chip_gen: v6e
topology: v6e:2x2x1
jax: 0.10.0
libtpu: 0.0.40
codegen_flags: <defaults>
</compile_context>

<pallas_src>
import math

import jax
import jax.numpy as jnp
from jax.experimental import pallas as pl
from jax.experimental.pallas import tpu as pltpu


def _round_up(x, m):
    return ((x + m - 1) // m) * m


# Split the batch grid into >=2 steps only when each half still has plenty of
# rows; this lets v7x's two TensorCores shard the "parallel" batch axis while
# keeping the grid as coarse as possible on single-TC v5e/v6e.
_MIN_ROWS_PER_STEP = 512

_USE_BUFFERED = hasattr(pl, "Buffered")


# ----------------------------------------------------------------------------
# Pallas kernel: whole MLP fused (matmul + bias + ReLU chain) in one body.
# ----------------------------------------------------------------------------
def _make_mlp_kernel(num_linear, compute_dtype):
    def kernel(*refs):
        # refs = (x_ref, w1, b1, w2, b2, ..., wN, bN, o_ref)
        x_ref = refs[0]
        o_ref = refs[-1]
        # In-kernel narrow cast: x is streamed f32, MXU operands are bf16.
        h = x_ref[...].astype(compute_dtype)
        for i in range(num_linear):
            w = refs[1 + 2 * i][...]                  # (in_i, out_i)  bf16
            b = refs[2 + 2 * i][...]                  # (1, out_i)     f32
            acc = jnp.dot(h, w, preferred_element_type=jnp.float32) + b
            if i < num_linear - 1:
                acc = jnp.maximum(acc, 0.0)           # ReLU stays in f32 (v5e VPU)
                h = acc.astype(compute_dtype)         # narrow for next MXU pass
            else:
                o_ref[...] = acc.astype(o_ref.dtype)  # unpadded (bm, out_dim)
    return kernel


# ----------------------------------------------------------------------------
# One-time parameter prep: zero-pad hidden dims to 128 lanes, cast to bf16/f32.
# ----------------------------------------------------------------------------
def prepare_params(params, compute_dtype=jnp.bfloat16):
    """params: list of (W, b) with W (in_i, out_i), b (1, out_i) in f32.

    Returns list of (W_pad bf16, b_pad f32) where every *hidden* dim is padded
    up to a multiple of 128 with zeros.  input_dim / output_dim are untouched.
    Zero padding is exact: padded h columns are ReLU(0 + 0) = 0 and padded W
    rows multiply those zeros, so the unpadded math is unchanged.
    """
    num_linear = len(params)
    dims = [params[0][0].shape[0]] + [w.shape[1] for w, _ in params]
    padded = list(dims)
    for j in range(1, num_linear):          # interior (hidden) dims only
        padded[j] = _round_up(dims[j], 128)

    prepped = []
    for i, (w, b) in enumerate(params):
        pin, pout = padded[i], padded[i + 1]
        w = jnp.pad(w, ((0, pin - w.shape[0]), (0, pout - w.shape[1])))
        b = jnp.pad(b, ((0, 0), (0, pout - b.shape[1])))
        prepped.append((jnp.asarray(w, compute_dtype),
                        jnp.asarray(b, jnp.float32)))
    return prepped


def _choose_bm(B, bm_request):
    b_pad = _round_up(B, 16)                              # bf16 sublane packing
    bm = min(_round_up(max(bm_request, 16), 16), b_pad)
    if b_pad >= 2 * _MIN_ROWS_PER_STEP:
        # >=2 grid steps so megacore (v7x) can shard the parallel batch axis.
        bm = min(bm, _round_up(pl.cdiv(b_pad, 2), 16))
    return bm


# ----------------------------------------------------------------------------
# Forward: exactly one pallas_call, no surrounding XLA passes.
# ----------------------------------------------------------------------------
def mlp_forward(x, prepped, *, bm=2048, compute_dtype=jnp.bfloat16,
                out_dtype=jnp.float32):
    """x: (B, input_dim) f32.  prepped: output of prepare_params()."""
    B, in_dim = x.shape
    num_linear = len(prepped)
    out_dim = prepped[-1][0].shape[1]

    bm = _choose_bm(B, bm)
    grid = (pl.cdiv(B, bm),)

    flat = [a for wb in prepped for a in wb]

    def const_spec(shape):
        # Constant index_map -> single resident copy; no double-buffering.
        if _USE_BUFFERED:
            return pl.BlockSpec(shape, lambda i: (0, 0),
                                pipeline_mode=pl.Buffered(1))
        return pl.BlockSpec(shape, lambda i: (0, 0))

    in_specs = [pl.BlockSpec((bm, in_dim), lambda i: (i, 0))]
    for w, b in prepped:
        in_specs.append(const_spec(w.shape))
        in_specs.append(const_spec(b.shape))
    out_specs = pl.BlockSpec((bm, out_dim), lambda i: (i, 0))

    flops = 2 * B * sum(w.shape[0] * w.shape[1] for w, _ in prepped)
    bytes_accessed = (x.size * x.dtype.itemsize
                      + B * out_dim * jnp.dtype(out_dtype).itemsize
                      + sum(a.size * a.dtype.itemsize for a in flat))

    return pl.pallas_call(
        _make_mlp_kernel(num_linear, compute_dtype),
        out_shape=jax.ShapeDtypeStruct((B, out_dim), out_dtype),
        grid_spec=pltpu.PrefetchScalarGridSpec(
            num_scalar_prefetch=0,
            grid=grid,
            in_specs=in_specs,
            out_specs=out_specs,
        ),
        compiler_params=pltpu.CompilerParams(
            dimension_semantics=("parallel",),
        ),
        cost_estimate=pl.CostEstimate(
            flops=flops, transcendentals=0, bytes_accessed=bytes_accessed),
    )(x, *flat)


# ----------------------------------------------------------------------------
# Deterministic parameter init (mirrors build_mlp defaults: orthogonal + zeros)
# ----------------------------------------------------------------------------
def _orthogonal(key, rows, cols, gain):
    n = max(rows, cols)
    a = jax.random.normal(key, (n, n), dtype=jnp.float32)
    q, r = jnp.linalg.qr(a)
    q = q * jnp.sign(jnp.diag(r))   # sign-fix for a unique decomposition
    return gain * q[:rows, :cols]


def init_mlp_params(key, input_dim, hidden_dim, output_dim, hidden_depth):
    """Returns list of (W_t, b) with W_t = W.T of shape (in, out), b = (1, out)."""
    gain = math.sqrt(2.0)  # nn.init.calculate_gain('relu')
    dims = [input_dim] + [hidden_dim] * hidden_depth + [output_dim]
    params = []
    for i in range(len(dims) - 1):
        key, sub = jax.random.split(key)
        d_in, d_out = dims[i], dims[i + 1]
        # PyTorch weight shape is (out, in); orthogonal_ applied there, then
        # pre-transposed to (in, out) for the kernel.
        w_pt = _orthogonal(sub, d_out, d_in, gain)          # (out, in)
        w_t = jnp.asarray(w_pt.T, dtype=jnp.float32)        # (in, out)
        b = jnp.zeros((1, d_out), dtype=jnp.float32)
        params.append((w_t, b))
    return params


def mlp_reference(x, prepped, compute_dtype=jnp.bfloat16):
    """Pure-JAX reference mirroring the kernel numerics (bf16 operands, f32 acc)."""
    n = len(prepped)
    h = x.astype(compute_dtype)
    out = None
    for i, (w, b) in enumerate(prepped):
        a = jnp.dot(h, w, preferred_element_type=jnp.float32) + b
        if i < n - 1:
            a = jnp.maximum(a, 0.0)
            h = a.astype(compute_dtype)
        else:
            out = a
    return out


# ----------------------------------------------------------------------------
if __name__ == "__main__":
    key = jax.random.PRNGKey(0)
    k_x, k_p = jax.random.split(key)

    B, input_dim, hidden_dim, output_dim, hidden_depth = 200, 32, 64, 16, 2

    x = jax.random.normal(k_x, (B, input_dim), dtype=jnp.float32)
    params = init_mlp_params(k_p, input_dim, hidden_dim, output_dim, hidden_depth)
    prepped = prepare_params(params)   # one-time pad + cast, reused every call

    # Default path: single (or megacore-split) batch tile.
    out = jax.block_until_ready(mlp_forward(x, prepped))

    # Multi-step grid path (partial last block) to exercise batch tiling.
    out_small = jax.block_until_ready(mlp_forward(x, prepped, bm=64))

    ref = mlp_reference(x, prepped)
    assert out.shape == (B, output_dim)
    assert out_small.shape == (B, output_dim)
    assert jnp.allclose(out, ref, atol=1e-2, rtol=1e-2), "mismatch vs reference"
    assert jnp.allclose(out_small, ref, atol=1e-2, rtol=1e-2), "mismatch (tiled) vs reference"

    print("KERNEL_OK")
</pallas_src>

<mosaic_0001>
module attributes {stable_mosaic.version = 11 : i64} {
  func.func @kernel(%arg0: i32, %arg1: memref<208x32xf32, #tpu.memory_space<vmem>>, %arg2: memref<32x128xbf16, #tpu.memory_space<vmem>>, %arg3: memref<1x128xf32, #tpu.memory_space<vmem>>, %arg4: memref<128x128xbf16, #tpu.memory_space<vmem>>, %arg5: memref<1x128xf32, #tpu.memory_space<vmem>>, %arg6: memref<128x16xbf16, #tpu.memory_space<vmem>>, %arg7: memref<1x16xf32, #tpu.memory_space<vmem>>, %arg8: memref<208x16xf32, #tpu.memory_space<vmem>>) attributes {dimension_semantics = [#tpu.dimension_semantics<parallel>], iteration_bounds = array<i64: 1>, scalar_prefetch = 0 : i64, scratch_operands = 0 : i64, tpu.core_type = #tpu.core_type<tc>, window_params = [{transform_indices = @transform_0, window_bounds = array<i64: 208, 32>}, {pipeline_mode = #tpu.pipeline_mode<synchronous>, transform_indices = @transform_1, window_bounds = array<i64: 32, 128>}, {pipeline_mode = #tpu.pipeline_mode<synchronous>, transform_indices = @transform_2, window_bounds = array<i64: 1, 128>}, {pipeline_mode = #tpu.pipeline_mode<synchronous>, transform_indices = @transform_3, window_bounds = array<i64: 128, 128>}, {pipeline_mode = #tpu.pipeline_mode<synchronous>, transform_indices = @transform_4, window_bounds = array<i64: 1, 128>}, {pipeline_mode = #tpu.pipeline_mode<synchronous>, transform_indices = @transform_5, window_bounds = array<i64: 128, 16>}, {pipeline_mode = #tpu.pipeline_mode<synchronous>, transform_indices = @transform_6, window_bounds = array<i64: 1, 16>}, {transform_indices = @transform_7, window_bounds = array<i64: 208, 16>}]} {
    %c0 = arith.constant 0 : index
    %c0_0 = arith.constant 0 : index
    %0 = vector.load %arg1[%c0, %c0_0] : memref<208x32xf32, #tpu.memory_space<vmem>>, vector<208x32xf32>
    %1 = arith.truncf %0 : vector<208x32xf32> to vector<208x32xbf16>
    %c0_1 = arith.constant 0 : index
    %c0_2 = arith.constant 0 : index
    %2 = vector.load %arg2[%c0_1, %c0_2] : memref<32x128xbf16, #tpu.memory_space<vmem>>, vector<32x128xbf16>
    %c0_3 = arith.constant 0 : index
    %c0_4 = arith.constant 0 : index
    %3 = vector.load %arg3[%c0_3, %c0_4] : memref<1x128xf32, #tpu.memory_space<vmem>>, vector<1x128xf32>
    %cst = arith.constant dense<0.000000e+00> : vector<208x128xf32>
    %4 = tpu.matmul %1, %2, %cst {dimension_numbers = #tpu.dot_dimension_numbers<[1], [0], [0], [1], [0, 0, 1, 1], [], []>} : vector<208x32xbf16>, vector<32x128xbf16>, vector<208x128xf32> -> vector<208x128xf32>
    %5 = vector.broadcast %3 : vector<1x128xf32> to vector<208x128xf32>
    %6 = arith.addf %4, %5 : vector<208x128xf32>
    %cst_5 = arith.constant 0.000000e+00 : f32
    %7 = vector.broadcast %cst_5 : f32 to vector<208x128xf32>
    %8 = arith.maximumf %6, %7 : vector<208x128xf32>
    %9 = arith.truncf %8 : vector<208x128xf32> to vector<208x128xbf16>
    %c0_6 = arith.constant 0 : index
    %c0_7 = arith.constant 0 : index
    %10 = vector.load %arg4[%c0_6, %c0_7] : memref<128x128xbf16, #tpu.memory_space<vmem>>, vector<128x128xbf16>
    %c0_8 = arith.constant 0 : index
    %c0_9 = arith.constant 0 : index
    %11 = vector.load %arg5[%c0_8, %c0_9] : memref<1x128xf32, #tpu.memory_space<vmem>>, vector<1x128xf32>
    %cst_10 = arith.constant dense<0.000000e+00> : vector<208x128xf32>
    %12 = tpu.matmul %9, %10, %cst_10 {dimension_numbers = #tpu.dot_dimension_numbers<[1], [0], [0], [1], [0, 0, 1, 1], [], []>} : vector<208x128xbf16>, vector<128x128xbf16>, vector<208x128xf32> -> vector<208x128xf32>
    %13 = vector.broadcast %11 : vector<1x128xf32> to vector<208x128xf32>
    %14 = arith.addf %12, %13 : vector<208x128xf32>
    %cst_11 = arith.constant 0.000000e+00 : f32
    %15 = vector.broadcast %cst_11 : f32 to vector<208x128xf32>
    %16 = arith.maximumf %14, %15 : vector<208x128xf32>
    %17 = arith.truncf %16 : vector<208x128xf32> to vector<208x128xbf16>
    %c0_12 = arith.constant 0 : index
    %c0_13 = arith.constant 0 : index
    %18 = vector.load %arg6[%c0_12, %c0_13] : memref<128x16xbf16, #tpu.memory_space<vmem>>, vector<128x16xbf16>
    %c0_14 = arith.constant 0 : index
    %c0_15 = arith.constant 0 : index
    %19 = vector.load %arg7[%c0_14, %c0_15] : memref<1x16xf32, #tpu.memory_space<vmem>>, vector<1x16xf32>
    %cst_16 = arith.constant dense<0.000000e+00> : vector<208x16xf32>
    %20 = tpu.matmul %17, %18, %cst_16 {dimension_numbers = #tpu.dot_dimension_numbers<[1], [0], [0], [1], [0, 0, 1, 1], [], []>} : vector<208x128xbf16>, vector<128x16xbf16>, vector<208x16xf32> -> vector<208x16xf32>
    %21 = vector.broadcast %19 : vector<1x16xf32> to vector<208x16xf32>
    %22 = arith.addf %20, %21 : vector<208x16xf32>
    %c0_17 = arith.constant 0 : index
    %c0_18 = arith.constant 0 : index
    %23 = vector.load %arg8[%c0_17, %c0_18] : memref<208x16xf32, #tpu.memory_space<vmem>>, vector<208x16xf32>
    tpu.vector_store %arg8[%c0_17, %c0_18], %22 {strides = array<i32>} : memref<208x16xf32, #tpu.memory_space<vmem>>, vector<208x16xf32>,
    return
  }
  func.func @transform_0(%arg0: i32) -> (i32, i32) {
    %c0_i32 = arith.constant 0 : i32
    %c0_i32_0 = arith.constant 0 : i32
    return %arg0, %c0_i32 : i32, i32
  }
  func.func @transform_1(%arg0: i32) -> (i32, i32) {
    %c0_i32 = arith.constant 0 : i32
    %c0_i32_0 = arith.constant 0 : i32
    %c0_i32_1 = arith.constant 0 : i32
    return %c0_i32, %c0_i32_0 : i32, i32
  }
  func.func @transform_2(%arg0: i32) -> (i32, i32) {
    %c0_i32 = arith.constant 0 : i32
    %c0_i32_0 = arith.constant 0 : i32
    %c0_i32_1 = arith.constant 0 : i32
    return %c0_i32, %c0_i32_0 : i32, i32
  }
  func.func @transform_3(%arg0: i32) -> (i32, i32) {
    %c0_i32 = arith.constant 0 : i32
    %c0_i32_0 = arith.constant 0 : i32
    %c0_i32_1 = arith.constant 0 : i32
    return %c0_i32, %c0_i32_0 : i32, i32
  }
  func.func @transform_4(%arg0: i32) -> (i32, i32) {
    %c0_i32 = arith.constant 0 : i32
    %c0_i32_0 = arith.constant 0 : i32
    %c0_i32_1 = arith.constant 0 : i32
    return %c0_i32, %c0_i32_0 : i32, i32
  }
  func.func @transform_5(%arg0: i32) -> (i32, i32) {
    %c0_i32 = arith.constant 0 : i32
    %c0_i32_0 = arith.constant 0 : i32
    %c0_i32_1 = arith.constant 0 : i32
    return %c0_i32, %c0_i32_0 : i32, i32
  }
  func.func @transform_6(%arg0: i32) -> (i32, i32) {
    %c0_i32 = arith.constant 0 : i32
    %c0_i32_0 = arith.constant 0 : i32
    %c0_i32_1 = arith.constant 0 : i32
    return %c0_i32, %c0_i32_0 : i32, i32
  }
  func.func @transform_7(%arg0: i32) -> (i32, i32) {
    %c0_i32 = arith.constant 0 : i32
    %c0_i32_0 = arith.constant 0 : i32
    return %arg0, %c0_i32 : i32, i32
  }
}

</mosaic_0001>

<bundles_post_ra>
// kernel: tpu_custom_call.1
= control target key start
LH: loop header
LB: loop body
LE: loop exit
PB: predicated region body
PF: predicated region fallthrough
CT: control target
= control target key end

     0   :  { %v1231_v1 = vmov 0.0   ;;  %vm1232_vm0 = vmmov 0   ;;  %vm89_vm1 = vcmask 261120   ;;  %vm760_vm2 = vcmask 130048   ;;  %s1738_s0 = inlined_call_operand.vmem [shape: f32[200,32], index: 0, kind: input, shape index: {}]   ;;  %s1739_s1 = inlined_call_operand.vmem [shape: bf16[32,128], index: 1, kind: input, shape index: {}]   ;;  %s1740_s2 = inlined_call_operand.vmem [shape: f32[1,128], index: 2, kind: input, shape index: {}]   ;;  %s1741_s3 = inlined_call_operand.vmem [shape: bf16[128,128], index: 3, kind: input, shape index: {}]   ;;  %s1742_s4 = inlined_call_operand.vmem [shape: f32[1,128], index: 4, kind: input, shape index: {}]   ;;  %s1743_s5 = inlined_call_operand.vmem [shape: bf16[128,16], index: 5, kind: input, shape index: {}]   ;;  %s1744_s6 = inlined_call_operand.vmem [shape: f32[1,16], index: 6, kind: input, shape index: {}]   ;;  %s1745_s7 = inlined_call_operand.vmem [shape: f32[200,16], index: 7, kind: output, shape index: {}]  }
   0x1   :  { %v1213_v0 = vld [vmem:[%s1739_s1 + $0x8] sm:$0xff]   ;;  %1015 = vmatprep.subr.bf16.mxu0 %v1231_v1  ;;  %1207 = vmatprep.subr.bf16.mxu1 %v1231_v1  ;;  %v1214_v2 = vld [vmem:[%s1739_s1] sm:$0xff]   ;;  %v41_v6 = vld [vmem:[%s1738_s0 + $0x70] sm:$0xff] }
   0x2   :  { %1016 = vmatpush3.bf16.msra.mxu0 %v1213_v0  ;;  %1019 = vmatprep.mubr.msk.bf16.mxu0 %vm1232_vm0, %v1231_v1  ;;  %v27_v3 = vld [vmem:[%s1738_s0] sm:$0xff]  ;;  %v28_v4 = vld [vmem:[%s1738_s0 + $0x8] sm:$0xff]  ;;  %v42_v7 = vld [vmem:[%s1738_s0 + $0x78] sm:$0xff] }
   0x3   :  { %1017 = vmatprep.subr.bf16.mxu0 %v1231_v1  ;;  %1209 = vmatpush3.bf16.msra.mxu1 %v1213_v0  ;;  %v53_v5 = vpack.c.bf16 %v28_v4, %v27_v3  ;;  %v60_v8 = vpack.c.bf16 %v42_v7, %v41_v6  ;;  %v29_v9 = vld [vmem:[%s1738_s0 + $0x10] sm:$0xff]  ;;  %v30_v10 = vld [vmem:[%s1738_s0 + $0x18] sm:$0xff]  ;;  %v43_v11 = vld [vmem:[%s1738_s0 + $0x80] sm:$0xff] }
   0x4   :  { %1208 = vmatprep.subr.bf16.mxu1 %v1231_v1  ;;  %1047 = vmatprep.mubr.msk.bf16.mxu1 %vm1232_vm0, %v1231_v1  ;;  %v44_v12 = vld [vmem:[%s1738_s0 + $0x88] sm:$0xff]  ;;  %v1215_v13 = vld [vmem:[%s1741_s3 + $0x38] sm:$0xff]   ;;  %v54_v14 = vpack.c.bf16 %v30_v10, %v29_v9  ;;  %v1216_v15 = vld [vmem:[%s1741_s3 + $0x30] sm:$0xff]  }
   0x5   :  { %v61_v16 = vpack.c.bf16 %v44_v12, %v43_v11  ;;  %v31_v17 = vld [vmem:[%s1738_s0 + $0x20] sm:$0xff]  ;;  %v32_v18 = vld [vmem:[%s1738_s0 + $0x28] sm:$0xff]  ;;  %v45_v19 = vld [vmem:[%s1738_s0 + $0x90] sm:$0xff] }
   0x6   :  { %1018 = vmatpush3.bf16.msra.mxu0 %v1214_v2  ;;  %v46_v20 = vld [vmem:[%s1738_s0 + $0x98] sm:$0xff]  ;;  %v1217_v21 = vld [vmem:[%s1741_s3 + $0x28] sm:$0xff]   ;;  %v1218_v22 = vld [vmem:[%s1741_s3 + $0x20] sm:$0xff]   ;;  %v55_v23 = vpack.c.bf16 %v32_v18, %v31_v17 }
   0x7   :  { %1210 = vmatpush3.bf16.msra.mxu1 %v1214_v2  ;;  %1139 = vmatprep.subr.bf16.mxu0 %v1231_v1  ;;  %v62_v24 = vpack.c.bf16 %v46_v20, %v45_v19  ;;  %v1219_v25 = vld [vmem:[%s1741_s3 + $0x18] sm:$0xff]   ;;  %v33_v26 = vld [vmem:[%s1738_s0 + $0x30] sm:$0xff]  ;;  %v47_v28 = vld [vmem:[%s1738_s0 + $0xa0] sm:$0xff] }
   0x8   :  { %1071 = vmatprep.subr.bf16.mxu1 %v1231_v1  ;;  %v34_v27 = vld [vmem:[%s1738_s0 + $0x38] sm:$0xff]  ;;  %v48_v29 = vld [vmem:[%s1738_s0 + $0xa8] sm:$0xff]  ;;  %v1220_v31 = vld [vmem:[%s1741_s3 + $0x10] sm:$0xff]  }
   0x9   :  { %1020 = vmatmul.mubr.msk.bf16.vlgmr.msra.gmra.mxu0 %vm89_vm1, %v53_v5  ;;  %v56_v30 = vpack.c.bf16 %v34_v27, %v33_v26  ;;  %v63_v32 = vpack.c.bf16 %v48_v29, %v47_v28  ;;  %v1221_v33 = vld [vmem:[%s1741_s3 + $0x8] sm:$0xff]   ;;  %v35_v34 = vld [vmem:[%s1738_s0 + $0x40] sm:$0xff]  ;;  %v49_v36 = vld [vmem:[%s1738_s0 + $0xb0] sm:$0xff] }
   0xa   :  { %1023 = vmatprep.mubr.msk.bf16.mxu0 %vm1232_vm0, %v1231_v1  ;;  %1048 = vmatmul.mubr.msk.bf16.vlgmr.msra.gmra.mxu1 %vm89_vm1, %v60_v8  ;;  %v36_v35 = vld [vmem:[%s1738_s0 + $0x48] sm:$0xff]  ;;  %v50_v37 = vld [vmem:[%s1738_s0 + $0xb8] sm:$0xff]  ;;  %v37_v40 = vld [vmem:[%s1738_s0 + $0x50] sm:$0xff] }
   0xb   :  { %1051 = vmatprep.mubr.msk.bf16.mxu1 %vm1232_vm0, %v1231_v1  ;;  %1072 = vmatpush3.bf16.msra.mxu1 %v1215_v13  ;;  %v57_v38 = vpack.c.bf16 %v36_v35, %v35_v34  ;;  %v64_v39 = vpack.c.bf16 %v50_v37, %v49_v36  ;;  %v38_v41 = vld [vmem:[%s1738_s0 + $0x58] sm:$0xff]  ;;  %v51_v42 = vld [vmem:[%s1738_s0 + $0xc0] sm:$0xff]  ;;  %v52_v43 = vld [vmem:[%s1738_s0 + $0xc8] sm:$0xff] }
   0xc   :  { %1073 = vmatprep.subr.bf16.mxu1 %v1231_v1  ;;  %v58_v44 = vpack.c.bf16 %v38_v41, %v37_v40  ;;  %v65_v45 = vpack.c.bf16 %v52_v43, %v51_v42  ;;  %v39_v46 = vld [vmem:[%s1738_s0 + $0x60] sm:$0xff]  ;;  %v40_v47 = vld [vmem:[%s1738_s0 + $0x68] sm:$0xff]  ;;  %v1223_v50 = vld [vmem:[%s1743_s5 + $0x38] sm:$0xff]  }
   0xd   :  { %v59_v48 = vpack.c.bf16 %v40_v47, %v39_v46  ;;  %v1222_v49 = vld [vmem:[%s1741_s3] sm:$0xff]   ;;  %1140 = vmatpush3.bf16.msra.mxu0 %v1223_v50  ;;  %v1224_v51 = vld [vmem:[%s1743_s5 + $0x30] sm:$0xff]   ;;  %v1225_v52 = vld [vmem:[%s1743_s5 + $0x28] sm:$0xff]  }
   0xe   :  { %1141 = vmatprep.subr.bf16.mxu0 %v1231_v1  ;;  %v1226_v53 = vld [vmem:[%s1743_s5 + $0x20] sm:$0xff]   ;;  %v1227_v54 = vld [vmem:[%s1743_s5 + $0x18] sm:$0xff]   ;;  %v1228_v55 = vld [vmem:[%s1743_s5 + $0x10] sm:$0xff]  }
   0xf   :  { %1074 = vmatpush3.bf16.msra.mxu1 %v1216_v15  ;;  %v1463_v56 = vld [vmem:[%s1740_s2] ss:$0 sm:$0xff]  ;;  %v1229_v59 = vld [vmem:[%s1743_s5 + $0x8] sm:$0xff]  }
  0x10   :  { %1075 = vmatprep.subr.bf16.mxu1 %v1231_v1 }
  0x11   :  { %1024 = vmatmul.mubr.msk.bf16.gmra.mxu0 %vm89_vm1, %v54_v14 }
  0x12   :  { %1027 = vmatprep.mubr.msk.bf16.mxu0 %vm1232_vm0, %v1231_v1  ;;  %1052 = vmatmul.mubr.msk.bf16.gmra.mxu1 %vm89_vm1, %v61_v16 }
  0x13   :  { %1055 = vmatprep.mubr.msk.bf16.mxu1 %vm1232_vm0, %v1231_v1  ;;  %1076 = vmatpush3.bf16.msra.mxu1 %v1217_v21 }
  0x14   :  { %1077 = vmatprep.subr.bf16.mxu1 %v1231_v1  ;;  %1142 = vmatpush3.bf16.msra.mxu0 %v1224_v51 }
  0x15   :  { %1143 = vmatprep.subr.bf16.mxu0 %v1231_v1 }
  0x17   :  { %1078 = vmatpush3.bf16.msra.mxu1 %v1218_v22 }
  0x18   :  { %1079 = vmatprep.subr.bf16.mxu1 %v1231_v1  ;;  %1144 = vmatpush3.bf16.msra.mxu0 %v1225_v52 }
  0x19   :  { %1028 = vmatmul.mubr.msk.bf16.gmra.mxu0 %vm89_vm1, %v55_v23  ;;  %1145 = vmatprep.subr.bf16.mxu0 %v1231_v1 }
  0x1a   :  { %1031 = vmatprep.mubr.msk.bf16.mxu0 %vm1232_vm0, %v1231_v1  ;;  %1056 = vmatmul.mubr.msk.bf16.gmra.mxu1 %vm89_vm1, %v62_v24 }
  0x1b   :  { %1059 = vmatprep.mubr.msk.bf16.mxu1 %vm1232_vm0, %v1231_v1  ;;  %1080 = vmatpush3.bf16.msra.mxu1 %v1219_v25 }
  0x1c   :  { %1081 = vmatprep.subr.bf16.mxu1 %v1231_v1  ;;  %1146 = vmatpush3.bf16.msra.mxu0 %v1226_v53 }
  0x1d   :  { %1147 = vmatprep.subr.bf16.mxu0 %v1231_v1 }
  0x1f   :  { %1082 = vmatpush3.bf16.msra.mxu1 %v1220_v31 }
  0x20   :  { %1083 = vmatprep.subr.bf16.mxu1 %v1231_v1  ;;  %1148 = vmatpush3.bf16.msra.mxu0 %v1227_v54 }
  0x21   :  { %1032 = vmatmul.mubr.msk.bf16.gmra.mxu0 %vm89_vm1, %v56_v30  ;;  %1149 = vmatprep.subr.bf16.mxu0 %v1231_v1 }
  0x22   :  { %1035 = vmatprep.mubr.msk.bf16.mxu0 %vm1232_vm0, %v1231_v1  ;;  %1060 = vmatmul.mubr.msk.bf16.gmra.mxu1 %vm89_vm1, %v63_v32 }
  0x23   :  { %1063 = vmatprep.mubr.msk.bf16.mxu1 %vm1232_vm0, %v1231_v1  ;;  %1084 = vmatpush3.bf16.msra.mxu1 %v1221_v33 }
  0x24   :  { %1085 = vmatprep.subr.bf16.mxu1 %v1231_v1  ;;  %1150 = vmatpush3.bf16.msra.mxu0 %v1228_v55 }
  0x25   :  { %1151 = vmatprep.subr.bf16.mxu0 %v1231_v1 }
  0x27   :  { %1086 = vmatpush3.bf16.msra.mxu1 %v1222_v49 }
  0x28   :  { %1152 = vmatpush3.bf16.msra.mxu0 %v1229_v59 }
  0x29   :  { %1036 = vmatmul.mubr.msk.bf16.gmra.mxu0 %vm89_vm1, %v57_v38  ;;  %1153 = vmatprep.subr.bf16.mxu0 %v1231_v1 }
  0x2a   :  { %1039 = vmatprep.mubr.msk.bf16.mxu0 %vm1232_vm0, %v1231_v1  ;;  %1064 = vmatmul.mubr.msk.bf16.gmra.mxu1 %vm89_vm1, %v64_v39 }
  0x2b   :  { %1067 = vmatprep.mubr.msk.bf16.mxu1 %vm1232_vm0, %v1231_v1 }
  0x31   :  { %1040 = vmatmul.mubr.msk.bf16.gmra.mxu0 %vm89_vm1, %v58_v44 }
  0x32   :  { %1043 = vmatprep.mubr.msk.bf16.mxu0 %vm1232_vm0, %v1231_v1  ;;  %1068 = vmatmul.mubr.msk.bf16.gmra.mxu1 %vm89_vm1, %v65_v45 }
  0x33   :  { %1087 = vmatprep.mubr.msk.bf16.mxu1 %vm1232_vm0, %v1231_v1 }
  0x39   :  { %1044 = vmatmul.mubr.msk.bf16.gmra.mxu0 %vm89_vm1, %v59_v48 }
  0x3a   :  { %1155 = vmatprep.mubr.msk.bf16.mxu0 %vm1232_vm0, %v1231_v1 }
  0xc9   :  { %v163_v57 = vpop.f32.mrf.mxu0 }
  0xca   :  { %v1465_v58 = vpop.f32.mrf.mxu1  ;;  %v164_v61 = vadd.f32 %v1463_v56, %v163_v57 }
  0xcb   :  { %v1021_v60 = vpop.f32.mrf.mxu0 }
  0xcc   :  { %v1049_v62 = vpop.f32.mrf.mxu1  ;;  %v266_v4 = vmax.f32 %v164_v61, 0.0 }
  0xcd   :  { %v166_v63 = vpop.f32.mrf.mxu0 }
  0xce   :  { %v167_v0 = vadd.f32 %v1463_v56, %v166_v63  ;;  %v1473_v2 = vpop.f32.mrf.mxu1 }
  0xcf   :  { %v1022_v3 = vpop.f32.mrf.mxu0 }
  0xd0   :  { %v267_v5 = vmax.f32 %v167_v0, 0.0  ;;  %v1050_v6 = vpop.f32.mrf.mxu1 }
  0xd1   :  { %v171_v7 = vpop.f32.mrf.mxu0 }
  0xd2   :  { %v292_v8 = vpack.c.bf16 %v267_v5, %v266_v4  ;;  %v1476_v9 = vpop.f32.mrf.mxu1  ;;  %v172_v11 = vadd.f32 %v1463_v56, %v171_v7 }
  0xd3   :  { %v1025_v10 = vpop.f32.mrf.mxu0 }
  0xd4   :  { %1088 = vmatmul.mubr.bf16.vlgmr.msra.gmra.mxu1 %v292_v8  ;;  %v1053_v12 = vpop.f32.mrf.mxu1  ;;  %v268_v17 = vmax.f32 %v172_v11, 0.0 }
  0xd5   :  { %v174_v13 = vpop.f32.mrf.mxu0  ;;  %1091 = vmatprep.mubr.msk.bf16.mxu1 %vm1232_vm0, %v1231_v1 }
  0xd6   :  { %v175_v14 = vadd.f32 %v1463_v56, %v174_v13  ;;  %v1482_v15 = vpop.f32.mrf.mxu1 }
  0xd7   :  { %v1026_v16 = vpop.f32.mrf.mxu0 }
  0xd8   :  { %v269_v18 = vmax.f32 %v175_v14, 0.0  ;;  %v1054_v19 = vpop.f32.mrf.mxu1 }
  0xd9   :  { %v179_v20 = vpop.f32.mrf.mxu0 }
  0xda   :  { %v293_v21 = vpack.c.bf16 %v269_v18, %v268_v17  ;;  %v1484_v22 = vpop.f32.mrf.mxu1  ;;  %v180_v24 = vadd.f32 %v1463_v56, %v179_v20 }
  0xdb   :  { %v1029_v23 = vpop.f32.mrf.mxu0 }
  0xdc   :  { %1092 = vmatmul.mubr.bf16.gmra.mxu1 %v293_v21  ;;  %v1057_v25 = vpop.f32.mrf.mxu1  ;;  %v270_v30 = vmax.f32 %v180_v24, 0.0  ;;  %v220_v24 = vadd.f32 %v1463_v56, %v1465_v58 }
  0xdd   :  { %v182_v26 = vpop.f32.mrf.mxu0  ;;  %1095 = vmatprep.mubr.msk.bf16.mxu1 %vm1232_vm0, %v1231_v1 }
  0xde   :  { %v183_v27 = vadd.f32 %v1463_v56, %v182_v26  ;;  %v1490_v28 = vpop.f32.mrf.mxu1  ;;  %v223_v26 = vadd.f32 %v1463_v56, %v1473_v2 }
  0xdf   :  { %v1030_v29 = vpop.f32.mrf.mxu0 }
  0xe0   :  { %v271_v31 = vmax.f32 %v183_v27, 0.0  ;;  %v1058_v32 = vpop.f32.mrf.mxu1  ;;  %v280_v27 = vmax.f32 %v220_v24, 0.0  ;;  %v281_v29 = vmax.f32 %v223_v26, 0.0 }
  0xe1   :  { %v187_v33 = vpop.f32.mrf.mxu0  ;;  %v231_v32 = vadd.f32 %v1463_v56, %v1482_v15 }
  0xe2   :  { %v294_v34 = vpack.c.bf16 %v271_v31, %v270_v30  ;;  %v1492_v35 = vpop.f32.mrf.mxu1  ;;  %v188_v37 = vadd.f32 %v1463_v56, %v187_v33  ;;  %v299_v30 = vpack.c.bf16 %v281_v29, %v280_v27  ;;  %v228_v31 = vadd.f32 %v1463_v56, %v1476_v9 }
  0xe3   :  { %v1033_v36 = vpop.f32.mrf.mxu0  ;;  %v283_v33 = vmax.f32 %v231_v32, 0.0 }
  0xe4   :  { %1096 = vmatmul.mubr.bf16.gmra.mxu1 %v294_v34  ;;  %v1061_v38 = vpop.f32.mrf.mxu1  ;;  %v272_v43 = vmax.f32 %v188_v37, 0.0  ;;  %v282_v58 = vmax.f32 %v228_v31, 0.0  ;;  %v236_v34 = vadd.f32 %v1463_v56, %v1484_v22  ;;  %v239_v36 = vadd.f32 %v1463_v56, %v1490_v28  ;;  %v1230_v22 = vld [vmem:[%s1743_s5] sm:$0xff]  }
  0xe5   :  { %v190_v39 = vpop.f32.mrf.mxu0  ;;  %1099 = vmatprep.mubr.msk.bf16.mxu1 %vm1232_vm0, %v1231_v1  ;;  %v244_v38 = vadd.f32 %v1463_v56, %v1492_v35  ;;  %1154 = vmatpush3.bf16.msra.mxu0 %v1230_v22 }
  0xe6   :  { %v191_v40 = vadd.f32 %v1463_v56, %v190_v39  ;;  %v1498_v41 = vpop.f32.mrf.mxu1  ;;  %v300_v2 = vpack.c.bf16 %v283_v33, %v282_v58  ;;  %v284_v9 = vmax.f32 %v236_v34, 0.0  ;;  %v285_v37 = vmax.f32 %v239_v36, 0.0 }
  0xe7   :  { %v1034_v42 = vpop.f32.mrf.mxu0  ;;  %v247_v39 = vadd.f32 %v1463_v56, %v1498_v41  ;;  %v286_v28 = vmax.f32 %v244_v38, 0.0 }
  0xe8   :  { %v273_v44 = vmax.f32 %v191_v40, 0.0  ;;  %v1062_v45 = vpop.f32.mrf.mxu1  ;;  %v301_v15 = vpack.c.bf16 %v285_v37, %v284_v9 }
  0xe9   :  { %v195_v46 = vpop.f32.mrf.mxu0  ;;  %v287_v40 = vmax.f32 %v247_v39, 0.0 }
  0xea   :  { %v295_v47 = vpack.c.bf16 %v273_v44, %v272_v43  ;;  %v1500_v48 = vpop.f32.mrf.mxu1  ;;  %v196_v50 = vadd.f32 %v1463_v56, %v195_v46 }
  0xeb   :  { %v1037_v49 = vpop.f32.mrf.mxu0  ;;  %v302_v42 = vpack.c.bf16 %v287_v40, %v286_v28  ;;  %v252_v43 = vadd.f32 %v1463_v56, %v1500_v48 }
  0xec   :  { %1100 = vmatmul.mubr.bf16.gmra.mxu1 %v295_v47  ;;  %v1065_v51 = vpop.f32.mrf.mxu1  ;;  %v274_v57 = vmax.f32 %v196_v50, 0.0 }
  0xed   :  { %v198_v52 = vpop.f32.mrf.mxu0  ;;  %1103 = vmatprep.mubr.msk.bf16.mxu1 %vm1232_vm0, %v1231_v1  ;;  %v288_v41 = vmax.f32 %v252_v43, 0.0  ;;  %v1556_v51 = vld [vmem:[%s1742_s4] ss:$0 sm:$0xff] }
  0xee   :  { %v199_v53 = vadd.f32 %v1463_v56, %v198_v52  ;;  %v1506_v54 = vpop.f32.mrf.mxu1 }
  0xef   :  { %v1038_v55 = vpop.f32.mrf.mxu0  ;;  %v255_v35 = vadd.f32 %v1463_v56, %v1506_v54 }
  0xf0   :  { %v275_v59 = vmax.f32 %v199_v53, 0.0  ;;  %v1066_v60 = vpop.f32.mrf.mxu1 }
  0xf1   :  { %v203_v61 = vpop.f32.mrf.mxu0  ;;  %v289_v44 = vmax.f32 %v255_v35, 0.0 }
  0xf2   :  { %v296_v62 = vpack.c.bf16 %v275_v59, %v274_v57  ;;  %v259_v63 = vpop.f32.mrf.mxu1  ;;  %v204_v3 = vadd.f32 %v1463_v56, %v203_v61 }
  0xf3   :  { %v1041_v0 = vpop.f32.mrf.mxu0  ;;  %v303_v45 = vpack.c.bf16 %v289_v44, %v288_v41  ;;  %v260_v46 = vadd.f32 %v1463_v56, %v259_v63 }
  0xf4   :  { %1104 = vmatmul.mubr.bf16.gmra.mxu1 %v296_v62  ;;  %v1069_v4 = vpop.f32.mrf.mxu1  ;;  %v276_v10 = vmax.f32 %v204_v3, 0.0 }
  0xf5   :  { %v206_v5 = vpop.f32.mrf.mxu0  ;;  %1107 = vmatprep.mubr.msk.bf16.mxu1 %vm1232_vm0, %v1231_v1  ;;  %v290_v49 = vmax.f32 %v260_v46, 0.0 }
  0xf6   :  { %v207_v6 = vadd.f32 %v1463_v56, %v206_v5  ;;  %v262_v7 = vpop.f32.mrf.mxu1 }
  0xf7   :  { %v1042_v8 = vpop.f32.mrf.mxu0  ;;  %v263_v47 = vadd.f32 %v1463_v56, %v262_v7 }
  0xf8   :  { %v277_v11 = vmax.f32 %v207_v6, 0.0  ;;  %v1070_v12 = vpop.f32.mrf.mxu1 }
  0xf9   :  { %v211_v13 = vpop.f32.mrf.mxu0  ;;  %v291_v48 = vmax.f32 %v263_v47, 0.0 }
  0xfa   :  { %v297_v14 = vpack.c.bf16 %v277_v11, %v276_v10  ;;  %v212_v17 = vadd.f32 %v1463_v56, %v211_v13 }
  0xfb   :  { %v1045_v16 = vpop.f32.mrf.mxu0  ;;  %v304_v50 = vpack.c.bf16 %v291_v48, %v290_v49 }
  0xfc   :  { %1108 = vmatmul.mubr.bf16.gmra.mxu1 %v297_v14  ;;  %v278_v21 = vmax.f32 %v212_v17, 0.0 }
  0xfd   :  { %v214_v18 = vpop.f32.mrf.mxu0  ;;  %1111 = vmatprep.mubr.msk.bf16.mxu1 %vm1232_vm0, %v1231_v1 }
  0xfe   :  { %v215_v19 = vadd.f32 %v1463_v56, %v214_v18 }
  0xff   :  { %v1046_v20 = vpop.f32.mrf.mxu0 }
 0x100   :  { %v279_v23 = vmax.f32 %v215_v19, 0.0 }
 0x102   :  { %v298_v25 = vpack.c.bf16 %v279_v23, %v278_v21 }
 0x104   :  { %1112 = vmatmul.mubr.bf16.gmra.mxu1 %v298_v25 }
 0x105   :  { %1115 = vmatprep.mubr.msk.bf16.mxu1 %vm1232_vm0, %v1231_v1 }
 0x10c   :  { %1116 = vmatmul.mubr.bf16.gmra.mxu1 %v299_v30 }
 0x10d   :  { %1119 = vmatprep.mubr.msk.bf16.mxu1 %vm1232_vm0, %v1231_v1 }
 0x114   :  { %1120 = vmatmul.mubr.bf16.gmra.mxu1 %v300_v2 }
 0x115   :  { %1123 = vmatprep.mubr.msk.bf16.mxu1 %vm1232_vm0, %v1231_v1 }
 0x11c   :  { %1124 = vmatmul.mubr.bf16.gmra.mxu1 %v301_v15 }
 0x11d   :  { %1127 = vmatprep.mubr.msk.bf16.mxu1 %vm1232_vm0, %v1231_v1 }
 0x124   :  { %1128 = vmatmul.mubr.bf16.gmra.mxu1 %v302_v42 }
 0x125   :  { %1131 = vmatprep.mubr.msk.bf16.mxu1 %vm1232_vm0, %v1231_v1 }
 0x12c   :  { %1132 = vmatmul.mubr.bf16.gmra.mxu1 %v303_v45 }
 0x12d   :  { %1135 = vmatprep.mubr.msk.bf16.mxu1 %vm1232_vm0, %v1231_v1 }
 0x134   :  { %1136 = vmatmul.mubr.bf16.gmra.mxu1 %v304_v50 }
 0x194   :  { %v410_v52 = vpop.f32.mrf.mxu1 }
 0x195   :  { %v411_v54 = vadd.f32 %v1556_v51, %v410_v52 }
 0x196   :  { %v1089_v53 = vpop.f32.mrf.mxu1 }
 0x197   :  { %v513_v59 = vmax.f32 %v411_v54, 0.0 }
 0x198   :  { %v413_v55 = vpop.f32.mrf.mxu1 }
 0x199   :  { %v414_v56 = vadd.f32 %v1556_v51, %v413_v55 }
 0x19a   :  { %v1090_v57 = vpop.f32.mrf.mxu1 }
 0x19b   :  { %v514_v60 = vmax.f32 %v414_v56, 0.0 }
 0x19c   :  { %v418_v61 = vpop.f32.mrf.mxu1 }
 0x19d   :  { %v539_v62 = vpack.c.bf16 %v514_v60, %v513_v59  ;;  %v419_v0 = vadd.f32 %v1556_v51, %v418_v61 }
 0x19e   :  { %v1093_v63 = vpop.f32.mrf.mxu1 }
 0x19f   :  { %1156 = vmatmul.mubr.bf16.vlgmr.msra.gmra.mxu0 %v539_v62  ;;  %v515_v6 = vmax.f32 %v419_v0, 0.0 }
 0x1a0   :  { %v421_v3 = vpop.f32.mrf.mxu1  ;;  %1159 = vmatprep.mubr.msk.bf16.mxu0 %vm1232_vm0, %v1231_v1 }
 0x1a1   :  { %v422_v4 = vadd.f32 %v1556_v51, %v421_v3 }
 0x1a2   :  { %v1094_v5 = vpop.f32.mrf.mxu1 }
 0x1a3   :  { %v516_v7 = vmax.f32 %v422_v4, 0.0 }
 0x1a4   :  { %v426_v8 = vpop.f32.mrf.mxu1 }
 0x1a5   :  { %v540_v10 = vpack.c.bf16 %v516_v7, %v515_v6  ;;  %v427_v12 = vadd.f32 %v1556_v51, %v426_v8 }
 0x1a6   :  { %v1097_v11 = vpop.f32.mrf.mxu1 }
 0x1a7   :  { %1160 = vmatmul.mubr.bf16.gmra.mxu0 %v540_v10  ;;  %v517_v17 = vmax.f32 %v427_v12, 0.0 }
 0x1a8   :  { %v429_v13 = vpop.f32.mrf.mxu1  ;;  %1163 = vmatprep.mubr.msk.bf16.mxu0 %vm1232_vm0, %v1231_v1 }
 0x1a9   :  { %v430_v14 = vadd.f32 %v1556_v51, %v429_v13 }
 0x1aa   :  { %v1098_v16 = vpop.f32.mrf.mxu1 }
 0x1ab   :  { %v518_v18 = vmax.f32 %v430_v14, 0.0 }
 0x1ac   :  { %v434_v19 = vpop.f32.mrf.mxu1 }
 0x1ad   :  { %v541_v20 = vpack.c.bf16 %v518_v18, %v517_v17  ;;  %v435_v23 = vadd.f32 %v1556_v51, %v434_v19 }
 0x1ae   :  { %v1101_v21 = vpop.f32.mrf.mxu1 }
 0x1af   :  { %1164 = vmatmul.mubr.bf16.gmra.mxu0 %v541_v20  ;;  %v519_v27 = vmax.f32 %v435_v23, 0.0 }
 0x1b0   :  { %v437_v24 = vpop.f32.mrf.mxu1  ;;  %1167 = vmatprep.mubr.msk.bf16.mxu0 %vm1232_vm0, %v1231_v1 }
 0x1b1   :  { %v438_v25 = vadd.f32 %v1556_v51, %v437_v24 }
 0x1b2   :  { %v1102_v26 = vpop.f32.mrf.mxu1 }
 0x1b3   :  { %v520_v29 = vmax.f32 %v438_v25, 0.0 }
 0x1b4   :  { %v442_v30 = vpop.f32.mrf.mxu1 }
 0x1b5   :  { %v542_v31 = vpack.c.bf16 %v520_v29, %v519_v27  ;;  %v443_v58 = vadd.f32 %v1556_v51, %v442_v30 }
 0x1b6   :  { %v1105_v32 = vpop.f32.mrf.mxu1 }
 0x1b7   :  { %1168 = vmatmul.mubr.bf16.gmra.mxu0 %v542_v31  ;;  %v521_v36 = vmax.f32 %v443_v58, 0.0 }
 0x1b8   :  { %v445_v33 = vpop.f32.mrf.mxu1  ;;  %1171 = vmatprep.mubr.msk.bf16.mxu0 %vm1232_vm0, %v1231_v1 }
 0x1b9   :  { %v446_v2 = vadd.f32 %v1556_v51, %v445_v33 }
 0x1ba   :  { %v1106_v34 = vpop.f32.mrf.mxu1 }
 0x1bb   :  { %v522_v9 = vmax.f32 %v446_v2, 0.0 }
 0x1bc   :  { %v450_v37 = vpop.f32.mrf.mxu1 }
 0x1bd   :  { %v543_v15 = vpack.c.bf16 %v522_v9, %v521_v36  ;;  %v451_v39 = vadd.f32 %v1556_v51, %v450_v37 }
 0x1be   :  { %v1109_v38 = vpop.f32.mrf.mxu1 }
 0x1bf   :  { %1172 = vmatmul.mubr.bf16.gmra.mxu0 %v543_v15  ;;  %v523_v42 = vmax.f32 %v451_v39, 0.0 }
 0x1c0   :  { %v453_v22 = vpop.f32.mrf.mxu1  ;;  %1175 = vmatprep.mubr.msk.bf16.mxu0 %vm1232_vm0, %v1231_v1 }
 0x1c1   :  { %v454_v28 = vadd.f32 %v1556_v51, %v453_v22 }
 0x1c2   :  { %v1110_v40 = vpop.f32.mrf.mxu1 }
 0x1c3   :  { %v524_v43 = vmax.f32 %v454_v28, 0.0 }
 0x1c4   :  { %v458_v35 = vpop.f32.mrf.mxu1 }
 0x1c5   :  { %v544_v41 = vpack.c.bf16 %v524_v43, %v523_v42  ;;  %v459_v45 = vadd.f32 %v1556_v51, %v458_v35 }
 0x1c6   :  { %v1113_v44 = vpop.f32.mrf.mxu1 }
 0x1c7   :  { %1176 = vmatmul.mubr.bf16.gmra.mxu0 %v544_v41  ;;  %v525_v48 = vmax.f32 %v459_v45, 0.0  ;;  %v1611_v44 = vld [vmem:[%s1744_s6] ss:$0 sm:$0xff] }
 0x1c8   :  { %v461_v46 = vpop.f32.mrf.mxu1  ;;  %1179 = vmatprep.mubr.msk.bf16.mxu0 %vm1232_vm0, %v1231_v1 }
 0x1c9   :  { %v462_v47 = vadd.f32 %v1556_v51, %v461_v46 }
 0x1ca   :  { %v1114_v49 = vpop.f32.mrf.mxu1 }
 0x1cb   :  { %v526_v50 = vmax.f32 %v462_v47, 0.0 }
 0x1cc   :  { %v466_v52 = vpop.f32.mrf.mxu1 }
 0x1cd   :  { %v545_v53 = vpack.c.bf16 %v526_v50, %v525_v48  ;;  %v467_v55 = vadd.f32 %v1556_v51, %v466_v52 }
 0x1ce   :  { %v1117_v54 = vpop.f32.mrf.mxu1 }
 0x1cf   :  { %1180 = vmatmul.mubr.bf16.gmra.mxu0 %v545_v53  ;;  %v527_v60 = vmax.f32 %v467_v55, 0.0 }
 0x1d0   :  { %v469_v56 = vpop.f32.mrf.mxu1  ;;  %1183 = vmatprep.mubr.msk.bf16.mxu0 %vm1232_vm0, %v1231_v1 }
 0x1d1   :  { %v470_v57 = vadd.f32 %v1556_v51, %v469_v56 }
 0x1d2   :  { %v1118_v59 = vpop.f32.mrf.mxu1 }
 0x1d3   :  { %v528_v61 = vmax.f32 %v470_v57, 0.0 }
 0x1d4   :  { %v474_v62 = vpop.f32.mrf.mxu1 }
 0x1d5   :  { %v546_v63 = vpack.c.bf16 %v528_v61, %v527_v60  ;;  %v475_v3 = vadd.f32 %v1556_v51, %v474_v62 }
 0x1d6   :  { %v1121_v0 = vpop.f32.mrf.mxu1 }
 0x1d7   :  { %1184 = vmatmul.mubr.bf16.gmra.mxu0 %v546_v63  ;;  %v529_v7 = vmax.f32 %v475_v3, 0.0 }
 0x1d8   :  { %v477_v4 = vpop.f32.mrf.mxu1  ;;  %1187 = vmatprep.mubr.msk.bf16.mxu0 %vm1232_vm0, %v1231_v1 }
 0x1d9   :  { %v478_v5 = vadd.f32 %v1556_v51, %v477_v4 }
 0x1da   :  { %v1122_v6 = vpop.f32.mrf.mxu1 }
 0x1db   :  { %v530_v8 = vmax.f32 %v478_v5, 0.0 }
 0x1dc   :  { %v482_v10 = vpop.f32.mrf.mxu1 }
 0x1dd   :  { %v547_v11 = vpack.c.bf16 %v530_v8, %v529_v7  ;;  %v483_v13 = vadd.f32 %v1556_v51, %v482_v10 }
 0x1de   :  { %v1125_v12 = vpop.f32.mrf.mxu1 }
 0x1df   :  { %1188 = vmatmul.mubr.bf16.gmra.mxu0 %v547_v11  ;;  %v531_v18 = vmax.f32 %v483_v13, 0.0 }
 0x1e0   :  { %v485_v14 = vpop.f32.mrf.mxu1  ;;  %1191 = vmatprep.mubr.msk.bf16.mxu0 %vm1232_vm0, %v1231_v1 }
 0x1e1   :  { %v486_v16 = vadd.f32 %v1556_v51, %v485_v14 }
 0x1e2   :  { %v1126_v17 = vpop.f32.mrf.mxu1 }
 0x1e3   :  { %v532_v19 = vmax.f32 %v486_v16, 0.0 }
 0x1e4   :  { %v490_v20 = vpop.f32.mrf.mxu1 }
 0x1e5   :  { %v548_v21 = vpack.c.bf16 %v532_v19, %v531_v18  ;;  %v491_v24 = vadd.f32 %v1556_v51, %v490_v20 }
 0x1e6   :  { %v1129_v23 = vpop.f32.mrf.mxu1 }
 0x1e7   :  { %1192 = vmatmul.mubr.bf16.gmra.mxu0 %v548_v21  ;;  %v533_v29 = vmax.f32 %v491_v24, 0.0 }
 0x1e8   :  { %v493_v25 = vpop.f32.mrf.mxu1  ;;  %1195 = vmatprep.mubr.msk.bf16.mxu0 %vm1232_vm0, %v1231_v1 }
 0x1e9   :  { %v494_v26 = vadd.f32 %v1556_v51, %v493_v25 }
 0x1ea   :  { %v1130_v27 = vpop.f32.mrf.mxu1 }
 0x1eb   :  { %v534_v30 = vmax.f32 %v494_v26, 0.0 }
 0x1ec   :  { %v498_v31 = vpop.f32.mrf.mxu1 }
 0x1ed   :  { %v549_v32 = vpack.c.bf16 %v534_v30, %v533_v29  ;;  %v499_v33 = vadd.f32 %v1556_v51, %v498_v31 }
 0x1ee   :  { %v1133_v58 = vpop.f32.mrf.mxu1 }
 0x1ef   :  { %1196 = vmatmul.mubr.bf16.gmra.mxu0 %v549_v32  ;;  %v535_v9 = vmax.f32 %v499_v33, 0.0 }
 0x1f0   :  { %v501_v2 = vpop.f32.mrf.mxu1  ;;  %1199 = vmatprep.mubr.msk.bf16.mxu0 %vm1232_vm0, %v1231_v1 }
 0x1f1   :  { %v502_v34 = vadd.f32 %v1556_v51, %v501_v2 }
 0x1f2   :  { %v1134_v36 = vpop.f32.mrf.mxu1 }
 0x1f3   :  { %v536_v37 = vmax.f32 %v502_v34, 0.0 }
 0x1f4   :  { %v506_v15 = vpop.f32.mrf.mxu1 }
 0x1f5   :  { %v550_v38 = vpack.c.bf16 %v536_v37, %v535_v9  ;;  %v507_v22 = vadd.f32 %v1556_v51, %v506_v15 }
 0x1f6   :  { %v1137_v39 = vpop.f32.mrf.mxu1 }
 0x1f7   :  { %1200 = vmatmul.mubr.bf16.gmra.mxu0 %v550_v38  ;;  %v537_v43 = vmax.f32 %v507_v22, 0.0 }
 0x1f8   :  { %v509_v28 = vpop.f32.mrf.mxu1  ;;  %1203 = vmatprep.mubr.msk.bf16.mxu0 %vm1232_vm0, %v1231_v1 }
 0x1f9   :  { %v510_v40 = vadd.f32 %v1556_v51, %v509_v28 }
 0x1fa   :  { %v1138_v42 = vpop.f32.mrf.mxu1 }
 0x1fb   :  { %v538_v35 = vmax.f32 %v510_v40, 0.0 }
 0x1fd   :  { %v551_v41 = vpack.c.bf16 %v538_v35, %v537_v43 }
 0x1ff   :  { %1204 = vmatmul.mubr.bf16.gmra.mxu0 %v551_v41 }
 0x25f   :  { %v657_v45 = vpop.f32.mrf.mxu0 }
 0x260   :  { %v658_v46 = vadd.f32 %v1611_v44, %v657_v45 }
 0x261   :  { %v1157_v47 = vpop.f32.mrf.mxu0 }
 0x262   :  { %761 = vst.msk [vmem:[#allocation2] sm:$0xff] %vm760_vm2, %v658_v46 }
 0x263   :  { %v660_v1 = vpop.f32.mrf.mxu0 }
 0x264   :  { %v661_v51 = vadd.f32 %v1611_v44, %v660_v1 }
 0x265   :  { %v1158_v49 = vpop.f32.mrf.mxu0 }
 0x266   :  { %762 = vst.msk [vmem:[#allocation2 + $0x8] sm:$0xff] %vm760_vm2, %v661_v51 }
 0x267   :  { %v665_v48 = vpop.f32.mrf.mxu0 }
 0x268   :  { %v666_v50 = vadd.f32 %v1611_v44, %v665_v48 }
 0x269   :  { %v865_v52 = vld [vmem:[#allocation2] sm:$0xff]  ;;  %v1161_v53 = vpop.f32.mrf.mxu0 }
 0x26a   :  { %866 = vst [vmem:[%s1745_s7] sm:$0xff] %v865_v52  ;;  %763 = vst.msk [vmem:[#allocation2 + $0x10] sm:$0xff] %vm760_vm2, %v666_v50 }
 0x26b   :  { %v668_v54 = vpop.f32.mrf.mxu0 }
 0x26c   :  { %v669_v55 = vadd.f32 %v1611_v44, %v668_v54 }
 0x26d   :  { %v867_v56 = vld [vmem:[#allocation2 + $0x8] sm:$0xff]  ;;  %v1162_v57 = vpop.f32.mrf.mxu0 }
 0x26e   :  { %868 = vst [vmem:[%s1745_s7 + $0x8] sm:$0xff] %v867_v56  ;;  %764 = vst.msk [vmem:[#allocation2 + $0x18] sm:$0xff] %vm760_vm2, %v669_v55 }
 0x26f   :  { %v673_v59 = vpop.f32.mrf.mxu0 }
 0x270   :  { %v674_v60 = vadd.f32 %v1611_v44, %v673_v59 }
 0x271   :  { %v869_v61 = vld [vmem:[#allocation2 + $0x10] sm:$0xff]  ;;  %v1165_v62 = vpop.f32.mrf.mxu0 }
 0x272   :  { %870 = vst [vmem:[%s1745_s7 + $0x10] sm:$0xff] %v869_v61  ;;  %765 = vst.msk [vmem:[#allocation2 + $0x20] sm:$0xff] %vm760_vm2, %v674_v60 }
 0x273   :  { %v676_v63 = vpop.f32.mrf.mxu0 }
 0x274   :  { %v677_v0 = vadd.f32 %v1611_v44, %v676_v63 }
 0x275   :  { %v871_v3 = vld [vmem:[#allocation2 + $0x18] sm:$0xff]  ;;  %v1166_v4 = vpop.f32.mrf.mxu0 }
 0x276   :  { %872 = vst [vmem:[%s1745_s7 + $0x18] sm:$0xff] %v871_v3  ;;  %766 = vst.msk [vmem:[#allocation2 + $0x28] sm:$0xff] %vm760_vm2, %v677_v0 }
 0x277   :  { %v681_v5 = vpop.f32.mrf.mxu0 }
 0x278   :  { %v682_v6 = vadd.f32 %v1611_v44, %v681_v5 }
 0x279   :  { %v873_v7 = vld [vmem:[#allocation2 + $0x20] sm:$0xff]  ;;  %v1169_v8 = vpop.f32.mrf.mxu0 }
 0x27a   :  { %874 = vst [vmem:[%s1745_s7 + $0x20] sm:$0xff] %v873_v7  ;;  %767 = vst.msk [vmem:[#allocation2 + $0x30] sm:$0xff] %vm760_vm2, %v682_v6 }
 0x27b   :  { %v684_v10 = vpop.f32.mrf.mxu0 }
 0x27c   :  { %v685_v11 = vadd.f32 %v1611_v44, %v684_v10 }
 0x27d   :  { %v875_v12 = vld [vmem:[#allocation2 + $0x28] sm:$0xff]  ;;  %v1170_v13 = vpop.f32.mrf.mxu0 }
 0x27e   :  { %876 = vst [vmem:[%s1745_s7 + $0x28] sm:$0xff] %v875_v12  ;;  %768 = vst.msk [vmem:[#allocation2 + $0x38] sm:$0xff] %vm760_vm2, %v685_v11 }
 0x27f   :  { %v689_v14 = vpop.f32.mrf.mxu0 }
 0x280   :  { %v690_v16 = vadd.f32 %v1611_v44, %v689_v14 }
 0x281   :  { %v877_v17 = vld [vmem:[#allocation2 + $0x30] sm:$0xff]  ;;  %v1173_v18 = vpop.f32.mrf.mxu0 }
 0x282   :  { %878 = vst [vmem:[%s1745_s7 + $0x30] sm:$0xff] %v877_v17  ;;  %769 = vst.msk [vmem:[#allocation2 + $0x40] sm:$0xff] %vm760_vm2, %v690_v16 }
 0x283   :  { %v692_v19 = vpop.f32.mrf.mxu0 }
 0x284   :  { %v693_v20 = vadd.f32 %v1611_v44, %v692_v19 }
 0x285   :  { %v879_v21 = vld [vmem:[#allocation2 + $0x38] sm:$0xff]  ;;  %v1174_v23 = vpop.f32.mrf.mxu0 }
 0x286   :  { %880 = vst [vmem:[%s1745_s7 + $0x38] sm:$0xff] %v879_v21  ;;  %770 = vst.msk [vmem:[#allocation2 + $0x48] sm:$0xff] %vm760_vm2, %v693_v20 }
 0x287   :  { %v697_v24 = vpop.f32.mrf.mxu0 }
 0x288   :  { %v698_v25 = vadd.f32 %v1611_v44, %v697_v24 }
 0x289   :  { %v881_v26 = vld [vmem:[#allocation2 + $0x40] sm:$0xff]  ;;  %v1177_v27 = vpop.f32.mrf.mxu0 }
 0x28a   :  { %882 = vst [vmem:[%s1745_s7 + $0x40] sm:$0xff] %v881_v26  ;;  %771 = vst.msk [vmem:[#allocation2 + $0x50] sm:$0xff] %vm760_vm2, %v698_v25 }
 0x28b   :  { %v700_v29 = vpop.f32.mrf.mxu0 }
 0x28c   :  { %v701_v30 = vadd.f32 %v1611_v44, %v700_v29 }
 0x28d   :  { %v883_v31 = vld [vmem:[#allocation2 + $0x48] sm:$0xff]  ;;  %v1178_v32 = vpop.f32.mrf.mxu0 }
 0x28e   :  { %884 = vst [vmem:[%s1745_s7 + $0x48] sm:$0xff] %v883_v31  ;;  %772 = vst.msk [vmem:[#allocation2 + $0x58] sm:$0xff] %vm760_vm2, %v701_v30 }
 0x28f   :  { %v705_v58 = vpop.f32.mrf.mxu0 }
 0x290   :  { %v706_v33 = vadd.f32 %v1611_v44, %v705_v58 }
 0x291   :  { %v885_v2 = vld [vmem:[#allocation2 + $0x50] sm:$0xff]  ;;  %v1181_v34 = vpop.f32.mrf.mxu0 }
 0x292   :  { %886 = vst [vmem:[%s1745_s7 + $0x50] sm:$0xff] %v885_v2  ;;  %773 = vst.msk [vmem:[#allocation2 + $0x60] sm:$0xff] %vm760_vm2, %v706_v33 }
 0x293   :  { %v708_v36 = vpop.f32.mrf.mxu0 }
 0x294   :  { %v709_v9 = vadd.f32 %v1611_v44, %v708_v36 }
 0x295   :  { %v887_v37 = vld [vmem:[#allocation2 + $0x58] sm:$0xff]  ;;  %v1182_v15 = vpop.f32.mrf.mxu0 }
 0x296   :  { %888 = vst [vmem:[%s1745_s7 + $0x58] sm:$0xff] %v887_v37  ;;  %774 = vst.msk [vmem:[#allocation2 + $0x68] sm:$0xff] %vm760_vm2, %v709_v9 }
 0x297   :  { %v713_v38 = vpop.f32.mrf.mxu0 }
 0x298   :  { %v714_v39 = vadd.f32 %v1611_v44, %v713_v38 }
 0x299   :  { %v889_v22 = vld [vmem:[#allocation2 + $0x60] sm:$0xff]  ;;  %v1185_v28 = vpop.f32.mrf.mxu0 }
 0x29a   :  { %890 = vst [vmem:[%s1745_s7 + $0x60] sm:$0xff] %v889_v22  ;;  %775 = vst.msk [vmem:[#allocation2 + $0x70] sm:$0xff] %vm760_vm2, %v714_v39 }
 0x29b   :  { %v716_v40 = vpop.f32.mrf.mxu0 }
 0x29c   :  { %v717_v42 = vadd.f32 %v1611_v44, %v716_v40 }
 0x29d   :  { %v891_v43 = vld [vmem:[#allocation2 + $0x68] sm:$0xff]  ;;  %v1186_v35 = vpop.f32.mrf.mxu0 }
 0x29e   :  { %892 = vst [vmem:[%s1745_s7 + $0x68] sm:$0xff] %v891_v43  ;;  %776 = vst.msk [vmem:[#allocation2 + $0x78] sm:$0xff] %vm760_vm2, %v717_v42 }
 0x29f   :  { %v721_v41 = vpop.f32.mrf.mxu0 }
 0x2a0   :  { %v722_v45 = vadd.f32 %v1611_v44, %v721_v41 }
 0x2a1   :  { %v893_v46 = vld [vmem:[#allocation2 + $0x70] sm:$0xff]  ;;  %v1189_v47 = vpop.f32.mrf.mxu0 }
 0x2a2   :  { %894 = vst [vmem:[%s1745_s7 + $0x70] sm:$0xff] %v893_v46  ;;  %777 = vst.msk [vmem:[#allocation2 + $0x80] sm:$0xff] %vm760_vm2, %v722_v45 }
 0x2a3   :  { %v724_v1 = vpop.f32.mrf.mxu0 }
 0x2a4   :  { %v725_v51 = vadd.f32 %v1611_v44, %v724_v1 }
 0x2a5   :  { %v895_v49 = vld [vmem:[#allocation2 + $0x78] sm:$0xff]  ;;  %v1190_v48 = vpop.f32.mrf.mxu0 }
 0x2a6   :  { %896 = vst [vmem:[%s1745_s7 + $0x78] sm:$0xff] %v895_v49  ;;  %778 = vst.msk [vmem:[#allocation2 + $0x88] sm:$0xff] %vm760_vm2, %v725_v51 }
 0x2a7   :  { %v729_v50 = vpop.f32.mrf.mxu0 }
 0x2a8   :  { %v730_v52 = vadd.f32 %v1611_v44, %v729_v50 }
 0x2a9   :  { %v897_v53 = vld [vmem:[#allocation2 + $0x80] sm:$0xff]  ;;  %v1193_v54 = vpop.f32.mrf.mxu0 }
 0x2aa   :  { %898 = vst [vmem:[%s1745_s7 + $0x80] sm:$0xff] %v897_v53  ;;  %779 = vst.msk [vmem:[#allocation2 + $0x90] sm:$0xff] %vm760_vm2, %v730_v52 }
 0x2ab   :  { %v732_v55 = vpop.f32.mrf.mxu0 }
 0x2ac   :  { %v733_v56 = vadd.f32 %v1611_v44, %v732_v55 }
 0x2ad   :  { %v899_v57 = vld [vmem:[#allocation2 + $0x88] sm:$0xff]  ;;  %v1194_v59 = vpop.f32.mrf.mxu0 }
 0x2ae   :  { %900 = vst [vmem:[%s1745_s7 + $0x88] sm:$0xff] %v899_v57  ;;  %780 = vst.msk [vmem:[#allocation2 + $0x98] sm:$0xff] %vm760_vm2, %v733_v56 }
 0x2af   :  { %v737_v60 = vpop.f32.mrf.mxu0 }
 0x2b0   :  { %v738_v61 = vadd.f32 %v1611_v44, %v737_v60 }
 0x2b1   :  { %v901_v62 = vld [vmem:[#allocation2 + $0x90] sm:$0xff]  ;;  %v1197_v63 = vpop.f32.mrf.mxu0 }
 0x2b2   :  { %902 = vst [vmem:[%s1745_s7 + $0x90] sm:$0xff] %v901_v62  ;;  %781 = vst.msk [vmem:[#allocation2 + $0xa0] sm:$0xff] %vm760_vm2, %v738_v61 }
 0x2b3   :  { %v740_v0 = vpop.f32.mrf.mxu0 }
 0x2b4   :  { %v741_v3 = vadd.f32 %v1611_v44, %v740_v0 }
 0x2b5   :  { %v903_v4 = vld [vmem:[#allocation2 + $0x98] sm:$0xff]  ;;  %v1198_v5 = vpop.f32.mrf.mxu0 }
 0x2b6   :  { %904 = vst [vmem:[%s1745_s7 + $0x98] sm:$0xff] %v903_v4  ;;  %782 = vst.msk [vmem:[#allocation2 + $0xa8] sm:$0xff] %vm760_vm2, %v741_v3 }
 0x2b7   :  { %v745_v6 = vpop.f32.mrf.mxu0 }
 0x2b8   :  { %v746_v7 = vadd.f32 %v1611_v44, %v745_v6 }
 0x2b9   :  { %v905_v8 = vld [vmem:[#allocation2 + $0xa0] sm:$0xff]  ;;  %v1201_v10 = vpop.f32.mrf.mxu0 }
 0x2ba   :  { %906 = vst [vmem:[%s1745_s7 + $0xa0] sm:$0xff] %v905_v8  ;;  %783 = vst.msk [vmem:[#allocation2 + $0xb0] sm:$0xff] %vm760_vm2, %v746_v7 }
 0x2bb   :  { %v748_v11 = vpop.f32.mrf.mxu0 }
 0x2bc   :  { %v749_v12 = vadd.f32 %v1611_v44, %v748_v11 }
 0x2bd   :  { %v907_v13 = vld [vmem:[#allocation2 + $0xa8] sm:$0xff]  ;;  %v1202_v14 = vpop.f32.mrf.mxu0 }
 0x2be   :  { %908 = vst [vmem:[%s1745_s7 + $0xa8] sm:$0xff] %v907_v13  ;;  %784 = vst.msk [vmem:[#allocation2 + $0xb8] sm:$0xff] %vm760_vm2, %v749_v12 }
 0x2bf   :  { %v753_v16 = vpop.f32.mrf.mxu0 }
 0x2c0   :  { %v754_v17 = vadd.f32 %v1611_v44, %v753_v16 }
 0x2c1   :  { %v909_v18 = vld [vmem:[#allocation2 + $0xb0] sm:$0xff]  ;;  %v1205_v19 = vpop.f32.mrf.mxu0 }
 0x2c2   :  { %910 = vst [vmem:[%s1745_s7 + $0xb0] sm:$0xff] %v909_v18  ;;  %785 = vst.msk [vmem:[#allocation2 + $0xc0] sm:$0xff] %vm760_vm2, %v754_v17 }
 0x2c3   :  { %v756_v20 = vpop.f32.mrf.mxu0 }
 0x2c5   :  { %v911_v21 = vld [vmem:[#allocation2 + $0xb8] sm:$0xff]  ;;  %v1206_v23 = vpop.f32.mrf.mxu0 }
 0x2c6   :  { %912 = vst [vmem:[%s1745_s7 + $0xb8] sm:$0xff] %v911_v21 }
 0x2c9   :  { %v913_v24 = vld [vmem:[#allocation2 + $0xc0] sm:$0xff] }
 0x2ca   :  { %914 = vst [vmem:[%s1745_s7 + $0xc0] sm:$0xff] %v913_v24 }

</bundles_post_ra>
